<compile_context>
chip_gen: v6e
topology: v6e:2x2x1
jax: 0.10.0
libtpu: 0.0.40
codegen_flags: <defaults>
</compile_context>

<pallas_src>
import jax
import jax.numpy as jnp
from jax.experimental import pallas as pl
from jax.experimental.pallas import tpu as pltpu


def _round_up(x, m):
    return (x + m - 1) // m * m


def _pick_block_b(B, target=128):
    """Largest multiple-of-8 divisor of B that is <= target; otherwise full B.

    target=128 fills the MXU M dimension on every chip (v5e MXU is 128-tall);
    bump to 256 on v6e/v7x if the per-tile VMEM budget allows.  When B is not a
    multiple of 8 we fall back to an untiled batch (block dims == array dims),
    which satisfies the (8,128) BlockSpec constraint.
    """
    if B % 8 != 0 or B <= target:
        return B
    best = 8
    for c in range(8, target + 1, 8):
        if B % c == 0:
            best = c
    return best


def _mask_ids(ids, lengths, pad_row):
    """Remap positions beyond the bag length to the zero-padded vocab row."""
    pos = jax.lax.broadcasted_iota(jnp.int32, ids.shape, dimension=ids.ndim - 1)
    return jnp.where(pos < lengths, ids, pad_row).astype(jnp.int32)


def _make_fused_towers_kernel(tower_meta):
    """Builds the fused kernel.

    tower_meta: tuple of (num_features, is_weighted) per tower.
    Per tower refs: ids [F,Bb,L] i32, (weights [F,Bb,L] f32 iff weighted),
                    folded [F,V_pad,N_pad] bf16 (= table_f @ W_f, zero padded).
    Shared refs:    bias [1,N_pad] f32, out [Bb,N_pad] f32.  No scratch.
    """

    def kernel(*refs):
        idx = 0
        towers = []
        for _f, weighted in tower_meta:
            ids_ref = refs[idx]; idx += 1
            if weighted:
                wts_ref = refs[idx]; idx += 1
            else:
                wts_ref = None
            fold_ref = refs[idx]; idx += 1
            towers.append((ids_ref, wts_ref, fold_ref))
        b_ref = refs[idx]          # [1, Np] f32
        out_ref = refs[idx + 1]    # [Bb, Np] f32

        Bb, Np = out_ref.shape
        acc = jnp.zeros((Bb, Np), jnp.float32)     # register accumulator, no scratch
        iota_cache = {}                            # hoist: JAX does not CSE iota

        for ids_ref, wts_ref, fold_ref in towers:
            F, _, L = ids_ref.shape
            Vp = fold_ref.shape[1]
            key = (L, Vp)
            if key not in iota_cache:
                iota_cache[key] = jax.lax.broadcasted_iota(jnp.int32, (Bb, L, Vp), 2)
            iota_v = iota_cache[key]

            for f in range(F):                     # static, small feature count
                # Lane-dense one-hot for ALL L positions at once (no serial VALU
                # chain over L).  Invalid positions were remapped to the zero pad
                # row in the wrapper, so no length/mask math in-kernel.
                onehot = (iota_v == ids_ref[f][:, :, None]).astype(jnp.float32)
                # f32 reshape is a layout no-op (L=8 sublanes, Vp lanes); cast to
                # bf16 only for the MXU operands (v5e VPU math stays f32/int32).
                lhs = onehot.reshape(Bb * L, Vp).astype(jnp.bfloat16)
                # Single lane-dense MXU call per feature: [Bb*L,Vp] @ [Vp,Np],
                # bf16 in / f32 accumulate.  The L reduction rides on the MXU.
                per_pos = jnp.dot(lhs, fold_ref[f],
                                  preferred_element_type=jnp.float32)
                per_pos = per_pos.reshape(Bb, L, Np)
                if wts_ref is not None:            # weighted pooling (f32 VPU)
                    per_pos = per_pos * wts_ref[f][:, :, None]
                acc = acc + jnp.sum(per_pos, axis=1)

        out_ref[...] = (acc + b_ref[...]).astype(out_ref.dtype)

    return kernel


def fused_tower_collection_forward(tower_params, tower_kjts, *, lane=128,
                                   target_block_b=128):
    """Fused forward of all towers: one pallas_call, output is the dim=1 concat."""
    B = tower_kjts[0]["ids"].shape[1]
    block_b = _pick_block_b(B, target_block_b)
    assert B % block_b == 0

    # ---- pass 1: output column layout --------------------------------------
    n_cols = [int(p["w"].shape[1]) for p in tower_params]
    n_total = sum(n_cols)
    n_pad = _round_up(n_total, lane)
    col_offsets, c = [], 0
    for n in n_cols:
        col_offsets.append(c)
        c += n

    # ---- pass 2: per-tower inputs -------------------------------------------
    inputs, in_specs, tower_meta = [], [], []
    for params, kjt, col, n in zip(tower_params, tower_kjts, col_offsets, n_cols):
        tables = params["tables"].astype(jnp.float32)            # [F, V, D]
        F, V, D = tables.shape
        w = params["w"].astype(jnp.float32).reshape(F, D, n)     # per-feature rows
        weighted = bool(params["weighted"])
        ids, lengths = kjt["ids"], kjt["lengths"]
        L = ids.shape[2]
        v_pad = _round_up(V + 1, lane)                           # +1 zero pad row

        # Invalid (beyond-length) positions -> zero pad row (drops them exactly).
        ids_m = _mask_ids(ids.astype(jnp.int32), lengths.astype(jnp.int32), V)

        # Host-side fold: table_f @ W_f -> [V, n], placed into this tower's
        # output columns of a lane-padded [v_pad, n_pad] bf16 matrix.  Every
        # in-kernel MXU call is then N=128 lane-dense and the pooled scratch
        # plus separate interaction matmul disappear.
        folded = jnp.einsum("fvd,fdn->fvn", tables, w)           # [F, V, n] f32
        folded_pad = jnp.zeros((F, v_pad, n_pad), jnp.float32)
        folded_pad = folded_pad.at[:, :V, col:col + n].set(folded)
        folded_pad = folded_pad.astype(jnp.bfloat16)

        inputs.append(ids_m)
        in_specs.append(pl.BlockSpec((F, block_b, L), lambda i: (0, i, 0)))
        if weighted:
            inputs.append(kjt["weights"].astype(jnp.float32))
            in_specs.append(pl.BlockSpec((F, block_b, L), lambda i: (0, i, 0)))
        inputs.append(folded_pad)
        in_specs.append(pl.BlockSpec((F, v_pad, n_pad), lambda i: (0, 0, 0)))
        tower_meta.append((F, weighted))

    # Fused bias for all towers (column-concatenated, lane-padded).
    b_pad = jnp.zeros((1, n_pad), jnp.float32)
    for params, col, n in zip(tower_params, col_offsets, n_cols):
        b_pad = b_pad.at[:, col:col + n].set(
            params["b"].astype(jnp.float32).reshape(1, n))
    inputs.append(b_pad)
    in_specs.append(pl.BlockSpec((1, n_pad), lambda i: (0, 0)))

    out = pl.pallas_call(
        _make_fused_towers_kernel(tuple(tower_meta)),
        out_shape=jax.ShapeDtypeStruct((B, n_pad), jnp.float32),
        grid_spec=pltpu.PrefetchScalarGridSpec(
            num_scalar_prefetch=0,
            grid=(B // block_b,),
            in_specs=in_specs,
            out_specs=pl.BlockSpec((block_b, n_pad), lambda i: (i, 0)),
        ),
        compiler_params=pltpu.CompilerParams(
            dimension_semantics=("parallel",),
            vmem_limit_bytes=32 * 1024 * 1024),
    )(*inputs)
    # slice away lane padding; columns are already the dim=1 concat of towers
    return out[:, :n_total]


def embedding_tower_collection_forward(towers, features, weighted_features):
    """Mirror of EmbeddingTowerCollection.forward (torch.cat(outputs, dim=1))."""
    kjts = []
    for tower in towers:
        has_kjt, has_wkjt = tower["input_params"]
        kjt = weighted_features if (has_wkjt and not has_kjt) else features
        assert kjt is not None
        kjts.append(kjt)
    return fused_tower_collection_forward(towers, kjts)


def _ref_tower(ids, weights, lengths, tables, w, b):
    F, B, L = ids.shape
    mask = jnp.arange(L)[None, None, :] < lengths               # [F, B, L]
    wts = jnp.where(mask, weights, 0.0)                         # [F, B, L]
    emb = tables[jnp.arange(F)[:, None, None], ids]             # [F, B, L, D]
    pooled = jnp.sum(emb * wts[..., None], axis=2)              # [F, B, D]
    cat = jnp.concatenate([pooled[f] for f in range(F)], axis=1)  # [B, F*D]
    return cat @ w + b


if __name__ == "__main__":
    key = jax.random.PRNGKey(0)
    ks = jax.random.split(key, 12)

    B, L, V, D = 16, 8, 64, 16
    F0, N0 = 2, 24   # tower 0: un-weighted EBC (2 features) + Linear(32 -> 24)
    F1, N1 = 1, 16   # tower 1: weighted EBC (1 feature)     + Linear(16 -> 16)

    # --- un-weighted features KJT (densified); weights only used by the reference ---
    ids0 = jax.random.randint(ks[0], (F0, B, L), 0, V, dtype=jnp.int32)
    len0 = jax.random.randint(ks[1], (F0, B, 1), 1, L + 1, dtype=jnp.int32)
    wts0 = jnp.ones((F0, B, L), jnp.float32)
    features = {"ids": ids0, "weights": wts0, "lengths": len0}

    # --- weighted features KJT (densified) ---
    ids1 = jax.random.randint(ks[2], (F1, B, L), 0, V, dtype=jnp.int32)
    len1 = jax.random.randint(ks[3], (F1, B, 1), 1, L + 1, dtype=jnp.int32)
    wts1 = jax.random.uniform(ks[4], (F1, B, L), jnp.float32)
    weighted_features = {"ids": ids1, "weights": wts1, "lengths": len1}

    # --- deterministic parameter init ---
    tower0 = {
        "input_params": (True, False),   # EBC, is_weighted=False -> `features`
        "weighted": False,
        "tables": 0.1 * jax.random.normal(ks[5], (F0, V, D), jnp.float32),
        "w": 0.1 * jax.random.normal(ks[6], (F0 * D, N0), jnp.float32),
        "b": 0.01 * jax.random.normal(ks[7], (1, N0), jnp.float32),
    }
    tower1 = {
        "input_params": (False, True),   # EBC, is_weighted=True -> `weighted_features`
        "weighted": True,
        "tables": 0.1 * jax.random.normal(ks[8], (F1, V, D), jnp.float32),
        "w": 0.1 * jax.random.normal(ks[9], (F1 * D, N1), jnp.float32),
        "b": 0.01 * jax.random.normal(ks[10], (1, N1), jnp.float32),
    }
    towers = [tower0, tower1]

    out = embedding_tower_collection_forward(towers, features, weighted_features)
    out = jax.block_until_ready(out)
    assert out.shape == (B, N0 + N1), out.shape

    # pure-JAX f32 reference; tolerance loosened for bf16 folded weights
    ref = jnp.concatenate(
        [_ref_tower(ids0, wts0, len0, tower0["tables"], tower0["w"], tower0["b"]),
         _ref_tower(ids1, wts1, len1, tower1["tables"], tower1["w"], tower1["b"])],
        axis=1)
    assert jnp.allclose(out, ref, atol=2e-2, rtol=2e-2), float(jnp.max(jnp.abs(out - ref)))

    print("KERNEL_OK")
</pallas_src>

<mosaic_0001>
module attributes {stable_mosaic.version = 11 : i64} {
  func.func @kernel(%arg0: i32, %arg1: memref<2x16x8xi32, #tpu.memory_space<vmem>>, %arg2: memref<2x128x128xbf16, #tpu.memory_space<vmem>>, %arg3: memref<1x16x8xi32, #tpu.memory_space<vmem>>, %arg4: memref<1x16x8xf32, #tpu.memory_space<vmem>>, %arg5: memref<1x128x128xbf16, #tpu.memory_space<vmem>>, %arg6: memref<1x128xf32, #tpu.memory_space<vmem>>, %arg7: memref<16x128xf32, #tpu.memory_space<vmem>>) attributes {dimension_semantics = [#tpu.dimension_semantics<parallel>], iteration_bounds = array<i64: 1>, scalar_prefetch = 0 : i64, scratch_operands = 0 : i64, tpu.core_type = #tpu.core_type<tc>, window_params = [{transform_indices = @transform_0, window_bounds = array<i64: 2, 16, 8>}, {pipeline_mode = #tpu.pipeline_mode<synchronous>, transform_indices = @transform_1, window_bounds = array<i64: 2, 128, 128>}, {transform_indices = @transform_2, window_bounds = array<i64: 1, 16, 8>}, {transform_indices = @transform_3, window_bounds = array<i64: 1, 16, 8>}, {pipeline_mode = #tpu.pipeline_mode<synchronous>, transform_indices = @transform_4, window_bounds = array<i64: 1, 128, 128>}, {pipeline_mode = #tpu.pipeline_mode<synchronous>, transform_indices = @transform_5, window_bounds = array<i64: 1, 128>}, {transform_indices = @transform_6, window_bounds = array<i64: 16, 128>}]} {
    %cst = arith.constant 0.000000e+00 : f32
    %0 = vector.broadcast %cst : f32 to vector<16x128xf32>
    %1 = tpu.iota {dimensions = array<i32: 2>} : vector<16x8x128xi32>
    %c0 = arith.constant 0 : index
    %c0_0 = arith.constant 0 : index
    %c0_1 = arith.constant 0 : index
    %2 = vector.load %arg1[%c0, %c0_0, %c0_1] : memref<2x16x8xi32, #tpu.memory_space<vmem>>, vector<1x16x8xi32>
    %3 = vector.shape_cast %2 : vector<1x16x8xi32> to vector<16x8xi32>
    %4 = vector.shape_cast %3 : vector<16x8xi32> to vector<16x8x1xi32>
    %5 = vector.broadcast %4 : vector<16x8x1xi32> to vector<16x8x128xi32>
    %6 = arith.cmpi eq, %1, %5 : vector<16x8x128xi32>
    %7 = arith.extui %6 : vector<16x8x128xi1> to vector<16x8x128xi32>
    %8 = arith.sitofp %7 : vector<16x8x128xi32> to vector<16x8x128xf32>
    %9 = vector.shape_cast %8 : vector<16x8x128xf32> to vector<128x128xf32>
    %10 = arith.truncf %9 : vector<128x128xf32> to vector<128x128xbf16>
    %c0_2 = arith.constant 0 : index
    %c0_3 = arith.constant 0 : index
    %c0_4 = arith.constant 0 : index
    %11 = vector.load %arg2[%c0_2, %c0_3, %c0_4] : memref<2x128x128xbf16, #tpu.memory_space<vmem>>, vector<1x128x128xbf16>
    %12 = vector.shape_cast %11 : vector<1x128x128xbf16> to vector<128x128xbf16>
    %cst_5 = arith.constant dense<0.000000e+00> : vector<128x128xf32>
    %13 = tpu.matmul %10, %12, %cst_5 {dimension_numbers = #tpu.dot_dimension_numbers<[1], [0], [0], [1], [0, 0, 1, 1], [], []>} : vector<128x128xbf16>, vector<128x128xbf16>, vector<128x128xf32> -> vector<128x128xf32>
    %14 = vector.shape_cast %13 : vector<128x128xf32> to vector<16x8x128xf32>
    %cst_6 = arith.constant dense<0.000000e+00> : vector<16x128xf32>
    %15 = vector.multi_reduction <add>, %14, %cst_6 [1] : vector<16x8x128xf32> to vector<16x128xf32>
    %16 = arith.addf %0, %15 : vector<16x128xf32>
    %c1 = arith.constant 1 : index
    %c0_7 = arith.constant 0 : index
    %c0_8 = arith.constant 0 : index
    %17 = vector.load %arg1[%c1, %c0_7, %c0_8] : memref<2x16x8xi32, #tpu.memory_space<vmem>>, vector<1x16x8xi32>
    %18 = vector.shape_cast %17 : vector<1x16x8xi32> to vector<16x8xi32>
    %19 = vector.shape_cast %18 : vector<16x8xi32> to vector<16x8x1xi32>
    %20 = vector.broadcast %19 : vector<16x8x1xi32> to vector<16x8x128xi32>
    %21 = arith.cmpi eq, %1, %20 : vector<16x8x128xi32>
    %22 = arith.extui %21 : vector<16x8x128xi1> to vector<16x8x128xi32>
    %23 = arith.sitofp %22 : vector<16x8x128xi32> to vector<16x8x128xf32>
    %24 = vector.shape_cast %23 : vector<16x8x128xf32> to vector<128x128xf32>
    %25 = arith.truncf %24 : vector<128x128xf32> to vector<128x128xbf16>
    %c1_9 = arith.constant 1 : index
    %c0_10 = arith.constant 0 : index
    %c0_11 = arith.constant 0 : index
    %26 = vector.load %arg2[%c1_9, %c0_10, %c0_11] : memref<2x128x128xbf16, #tpu.memory_space<vmem>>, vector<1x128x128xbf16>
    %27 = vector.shape_cast %26 : vector<1x128x128xbf16> to vector<128x128xbf16>
    %cst_12 = arith.constant dense<0.000000e+00> : vector<128x128xf32>
    %28 = tpu.matmul %25, %27, %cst_12 {dimension_numbers = #tpu.dot_dimension_numbers<[1], [0], [0], [1], [0, 0, 1, 1], [], []>} : vector<128x128xbf16>, vector<128x128xbf16>, vector<128x128xf32> -> vector<128x128xf32>
    %29 = vector.shape_cast %28 : vector<128x128xf32> to vector<16x8x128xf32>
    %cst_13 = arith.constant dense<0.000000e+00> : vector<16x128xf32>
    %30 = vector.multi_reduction <add>, %29, %cst_13 [1] : vector<16x8x128xf32> to vector<16x128xf32>
    %31 = arith.addf %16, %30 : vector<16x128xf32>
    %c0_14 = arith.constant 0 : index
    %c0_15 = arith.constant 0 : index
    %c0_16 = arith.constant 0 : index
    %32 = vector.load %arg3[%c0_14, %c0_15, %c0_16] : memref<1x16x8xi32, #tpu.memory_space<vmem>>, vector<1x16x8xi32>
    %33 = vector.shape_cast %32 : vector<1x16x8xi32> to vector<16x8xi32>
    %34 = vector.shape_cast %33 : vector<16x8xi32> to vector<16x8x1xi32>
    %35 = vector.broadcast %34 : vector<16x8x1xi32> to vector<16x8x128xi32>
    %36 = arith.cmpi eq, %1, %35 : vector<16x8x128xi32>
    %37 = arith.extui %36 : vector<16x8x128xi1> to vector<16x8x128xi32>
    %38 = arith.sitofp %37 : vector<16x8x128xi32> to vector<16x8x128xf32>
    %39 = vector.shape_cast %38 : vector<16x8x128xf32> to vector<128x128xf32>
    %40 = arith.truncf %39 : vector<128x128xf32> to vector<128x128xbf16>
    %c0_17 = arith.constant 0 : index
    %c0_18 = arith.constant 0 : index
    %c0_19 = arith.constant 0 : index
    %41 = vector.load %arg5[%c0_17, %c0_18, %c0_19] : memref<1x128x128xbf16, #tpu.memory_space<vmem>>, vector<1x128x128xbf16>
    %42 = vector.shape_cast %41 : vector<1x128x128xbf16> to vector<128x128xbf16>
    %cst_20 = arith.constant dense<0.000000e+00> : vector<128x128xf32>
    %43 = tpu.matmul %40, %42, %cst_20 {dimension_numbers = #tpu.dot_dimension_numbers<[1], [0], [0], [1], [0, 0, 1, 1], [], []>} : vector<128x128xbf16>, vector<128x128xbf16>, vector<128x128xf32> -> vector<128x128xf32>
    %44 = vector.shape_cast %43 : vector<128x128xf32> to vector<16x8x128xf32>
    %c0_21 = arith.constant 0 : index
    %c0_22 = arith.constant 0 : index
    %c0_23 = arith.constant 0 : index
    %45 = vector.load %arg4[%c0_21, %c0_22, %c0_23] : memref<1x16x8xf32, #tpu.memory_space<vmem>>, vector<1x16x8xf32>
    %46 = vector.shape_cast %45 : vector<1x16x8xf32> to vector<16x8xf32>
    %47 = vector.shape_cast %46 : vector<16x8xf32> to vector<16x8x1xf32>
    %48 = vector.broadcast %47 : vector<16x8x1xf32> to vector<16x8x128xf32>
    %49 = arith.mulf %44, %48 : vector<16x8x128xf32>
    %cst_24 = arith.constant dense<0.000000e+00> : vector<16x128xf32>
    %50 = vector.multi_reduction <add>, %49, %cst_24 [1] : vector<16x8x128xf32> to vector<16x128xf32>
    %51 = arith.addf %31, %50 : vector<16x128xf32>
    %c0_25 = arith.constant 0 : index
    %c0_26 = arith.constant 0 : index
    %52 = vector.load %arg6[%c0_25, %c0_26] : memref<1x128xf32, #tpu.memory_space<vmem>>, vector<1x128xf32>
    %53 = vector.broadcast %52 : vector<1x128xf32> to vector<16x128xf32>
    %54 = arith.addf %51, %53 : vector<16x128xf32>
    %c0_27 = arith.constant 0 : index
    %c0_28 = arith.constant 0 : index
    %55 = vector.load %arg7[%c0_27, %c0_28] : memref<16x128xf32, #tpu.memory_space<vmem>>, vector<16x128xf32>
    tpu.vector_store %arg7[%c0_27, %c0_28], %54 {strides = array<i32>} : memref<16x128xf32, #tpu.memory_space<vmem>>, vector<16x128xf32>,
    return
  }
  func.func @transform_0(%arg0: i32) -> (i32, i32, i32) {
    %c0_i32 = arith.constant 0 : i32
    %c0_i32_0 = arith.constant 0 : i32
    %c0_i32_1 = arith.constant 0 : i32
    return %c0_i32, %arg0, %c0_i32_0 : i32, i32, i32
  }
  func.func @transform_1(%arg0: i32) -> (i32, i32, i32) {
    %c0_i32 = arith.constant 0 : i32
    %c0_i32_0 = arith.constant 0 : i32
    %c0_i32_1 = arith.constant 0 : i32
    %c0_i32_2 = arith.constant 0 : i32
    return %c0_i32, %c0_i32_0, %c0_i32_1 : i32, i32, i32
  }
  func.func @transform_2(%arg0: i32) -> (i32, i32, i32) {
    %c0_i32 = arith.constant 0 : i32
    %c0_i32_0 = arith.constant 0 : i32
    %c0_i32_1 = arith.constant 0 : i32
    return %c0_i32, %arg0, %c0_i32_0 : i32, i32, i32
  }
  func.func @transform_3(%arg0: i32) -> (i32, i32, i32) {
    %c0_i32 = arith.constant 0 : i32
    %c0_i32_0 = arith.constant 0 : i32
    %c0_i32_1 = arith.constant 0 : i32
    return %c0_i32, %arg0, %c0_i32_0 : i32, i32, i32
  }
  func.func @transform_4(%arg0: i32) -> (i32, i32, i32) {
    %c0_i32 = arith.constant 0 : i32
    %c0_i32_0 = arith.constant 0 : i32
    %c0_i32_1 = arith.constant 0 : i32
    %c0_i32_2 = arith.constant 0 : i32
    return %c0_i32, %c0_i32_0, %c0_i32_1 : i32, i32, i32
  }
  func.func @transform_5(%arg0: i32) -> (i32, i32) {
    %c0_i32 = arith.constant 0 : i32
    %c0_i32_0 = arith.constant 0 : i32
    %c0_i32_1 = arith.constant 0 : i32
    return %c0_i32, %c0_i32_0 : i32, i32
  }
  func.func @transform_6(%arg0: i32) -> (i32, i32) {
    %c0_i32 = arith.constant 0 : i32
    %c0_i32_0 = arith.constant 0 : i32
    return %arg0, %c0_i32 : i32, i32
  }
}

</mosaic_0001>

<bundles_post_ra>
// kernel: tpu_custom_call.1
= control target key start
LH: loop header
LB: loop body
LE: loop exit
PB: predicated region body
PF: predicated region fallthrough
CT: control target
= control target key end

     0   :  { %11 = vsyncpa [#allocation3], 0  ;;  %s2364_s0 = inlined_call_operand.vmem [shape: s32[2,16,8], index: 0, kind: input, shape index: {}]   ;;  %s2365_s1 = inlined_call_operand.hbm [shape: bf16[2,128,128], index: 1, kind: input, shape index: {}]   ;;  %s2366_s2 = inlined_call_operand.vmem [shape: s32[1,16,8], index: 2, kind: input, shape index: {}]   ;;  %s2367_s3 = inlined_call_operand.vmem [shape: f32[1,16,8], index: 3, kind: input, shape index: {}]   ;;  %s2368_s4 = inlined_call_operand.vmem [shape: bf16[1,128,128], index: 4, kind: input, shape index: {}]   ;;  %s2369_s5 = inlined_call_operand.vmem [shape: f32[1,128], index: 5, kind: input, shape index: {}]   ;;  %s2370_s6 = inlined_call_operand.hbm [shape: f32[16,128], index: 6, kind: output, shape index: {}]  }
   0x1   :  { %12 = vsyncpa [#allocation4], 0  ;;  %s1955_s21 = smov [#allocation2]  }
   0x2   :  { %s20_s22 = sshll.u32 %s1955_s21, 4  ;;  %s21_s22 = int_to_ptr.vmem [resolvable:$true] %s20_s22 }
   0x3   :  { %s1919_s23 = scalar_lea.vmem %s21_s22, 2048  ;;  %p1924_p1 = scmp.lt.s32.totalorder %s21_s22, %s21_s22 }
   0x4   :  { %p1920_p0 = scmp.ne.s32.totalorder %s21_s22, %s1919_s23  ;;  %p1925_p2 = scmp.lt.s32.totalorder %s1919_s23, %s1919_s23 }
   0x6   :  { %p1926_p3 = por %p1925_p2, %p1924_p1 }
   0x8   :  { %p1927_p4 = pnand %p1926_p3, %p1920_p0 }
   0xa   :  { %1930 = shalt.err (!%p1927_p4)
}
   0xb   :  { %s1956_s24 = smov 64   ;;  %s1957_s25 = smov 4  }
   0xc   :  { %26 = dma.hbm_to_vmem [thread:$0]  %s2365_s1, 2048, %s21_s22, [#allocation3], %s1956_s24, %s1956_s24, %s1957_s25  }
   0xd   :  { %1951 = dma.done.wait [#allocation3], 2048  }
   0xe   :  { %1952 = vsyncadd [#allocation3], 4294965248  ;;  %v39_v0 = vlaneseq  ;;  %v2008_v4 = vld [vmem:[%s2364_s0 + $0x10] sm:$0xff]  ;;  %v2013_v5 = vld [vmem:[%s2364_s0] sm:$0xff] }
   0xf   :  { %v1887_v10 = vld [vmem:[#allocation2 + $0x38] sm:$0xff]   ;;  %v1888_v13 = vld [vmem:[#allocation2 + $0x30] sm:$0xff]   ;;  %v1890_v17 = vld [vmem:[#allocation2 + $0x28] sm:$0xff]  }
  0x10   :  { %v44_v1 = vshrl.u32 %v39_v0, 7  ;;  %1768 = vmatprep.subr.bf16.mxu0 %v1887_v10  ;;  %v1889_v14 = vld [vmem:[#allocation2 + $0x78] sm:$0xff]   ;;  %v1891_v18 = vld [vmem:[#allocation2 + $0x70] sm:$0xff]   ;;  %v1892_v20 = vld [vmem:[#allocation2 + $0x20] sm:$0xff]  }
  0x11   :  { %1769 = vmatpush3.bf16.msra.mxu0 %v1887_v10  ;;  %1800 = vmatprep.subr.bf16.mxu1 %v1889_v14  ;;  %v1893_v24 = vld [vmem:[#allocation2 + $0x68] sm:$0xff]   ;;  %v1894_v25 = vld [vmem:[#allocation2 + $0x18] sm:$0xff]   ;;  %v1895_v28 = vld [vmem:[#allocation2 + $0x60] sm:$0xff]  }
  0x12   :  { %v2001_v2 = vsub.s32 0, %v44_v1  ;;  %v2003_v3 = vsub.s32 1, %v44_v1  ;;  %v2019_v8 = vsub.s32 3, %v44_v1  ;;  %v2021_v9 = vsub.s32 2, %v44_v1  ;;  %1770 = vmatprep.subr.bf16.mxu0 %v1888_v13  ;;  %1801 = vmatpush3.bf16.msra.mxu1 %v1889_v14  ;;  %v1896_v30 = vld [vmem:[#allocation2 + $0x10] sm:$0xff]   ;;  %v1897_v32 = vld [vmem:[#allocation2 + $0x58] sm:$0xff]  }
  0x13   :  { %v2031_v19 = vsub.s32 5, %v44_v1  ;;  %v2037_v23 = vsub.s32 4, %v44_v1  ;;  %1802 = vmatprep.subr.bf16.mxu1 %v1891_v18  ;;  %v2043_v29 = vsub.s32 7, %v44_v1  ;;  %v2045_v31 = vsub.s32 6, %v44_v1  ;;  %v1898_v35 = vld [vmem:[#allocation2 + $0x8] sm:$0xff]   ;;  %v1899_v38 = vld [vmem:[#allocation2 + $0x50] sm:$0xff]  }
  0x14   :  { %v490_v6 = vrot.slane %v2008_v4, %v2001_v2  ;;  %v46_v7 = vrot.slane %v2013_v5, %v2001_v2  ;;  %v497_v11 = vrot.slane %v2008_v4, %v2003_v3  ;;  %v53_v12 = vrot.slane %v2013_v5, %v2003_v3  ;;  %v1900_v39 = vld [vmem:[#allocation2] sm:$0xff]   ;;  %v42_v42 = vld [vmem:[%s2364_s0 + $0x8] sm:$0xff]  ;;  %v2067_v46 = vld [vmem:[%s2368_s4 + $0x38] sm:$0xff]  }
  0x15   :  { %v67_v15 = vrot.slane %v2013_v5, %v2019_v8  ;;  %v60_v16 = vrot.slane %v2013_v5, %v2021_v9  ;;  %1771 = vmatpush3.bf16.msra.mxu0 %v1888_v13  ;;  %v511_v21 = vrot.slane %v2008_v4, %v2019_v8  ;;  %v504_v22 = vrot.slane %v2008_v4, %v2021_v9  ;;  %v1901_v43 = vld [vmem:[#allocation2 + $0x48] sm:$0xff]   ;;  %v1638_v47 = vld [vmem:[%s2364_s0 + $0x18] sm:$0xff]  ;;  %v1902_v48 = vld [vmem:[#allocation2 + $0x40] sm:$0xff]  }
  0x16   :  { %492 = vbcast.lane.b32.xlu1 %v490_v6, 256  ;;  %48 = vbcast.lane.b32.xlu0 %v46_v7, 256  ;;  %v81_v26 = vrot.slane %v2013_v5, %v2031_v19  ;;  %v74_v27 = vrot.slane %v2013_v5, %v2037_v23  ;;  %v525_v33 = vrot.slane %v2008_v4, %v2031_v19  ;;  %v929_v63 = vld [vmem:[%s2366_s2] sm:$0xff] }
  0x17   :  { %1772 = vmatprep.subr.bf16.mxu0 %v1890_v17  ;;  %1803 = vmatpush3.bf16.msra.mxu1 %v1891_v18  ;;  %v518_v34 = vrot.slane %v2008_v4, %v2037_v23  ;;  %v95_v36 = vrot.slane %v2013_v5, %v2043_v29  ;;  %v88_v37 = vrot.slane %v2013_v5, %v2045_v31  ;;  %v930_v5 = vld [vmem:[%s2366_s2 + $0x8] sm:$0xff] }
  0x18   :  { %1804 = vmatprep.subr.bf16.mxu1 %v1893_v24  ;;  %v539_v40 = vrot.slane %v2008_v4, %v2043_v29  ;;  %v532_v41 = vrot.slane %v2008_v4, %v2045_v31  ;;  %v109_v44 = vrot.slane %v42_v42, %v2003_v3  ;;  %v102_v45 = vrot.slane %v42_v42, %v2001_v2 }
  0x19   :  { %1773 = vmatpush3.bf16.msra.mxu0 %v1890_v17  ;;  %v553_v49 = vrot.slane %v1638_v47, %v2003_v3  ;;  %v546_v50 = vrot.slane %v1638_v47, %v2001_v2  ;;  %v123_v51 = vrot.slane %v42_v42, %v2019_v8  ;;  %v116_v52 = vrot.slane %v42_v42, %v2021_v9 }
  0x1a   :  { %499 = vbcast.lane.b32.xlu1 %v497_v11, 256  ;;  %55 = vbcast.lane.b32.xlu0 %v53_v12, 256  ;;  %v567_v53 = vrot.slane %v1638_v47, %v2019_v8  ;;  %v560_v54 = vrot.slane %v1638_v47, %v2021_v9  ;;  %v137_v55 = vrot.slane %v42_v42, %v2031_v19 }
  0x1b   :  { %1774 = vmatprep.subr.bf16.mxu0 %v1892_v20  ;;  %1805 = vmatpush3.bf16.msra.mxu1 %v1893_v24  ;;  %v130_v56 = vrot.slane %v42_v42, %v2037_v23  ;;  %v581_v57 = vrot.slane %v1638_v47, %v2031_v19  ;;  %v574_v58 = vrot.slane %v1638_v47, %v2037_v23  ;;  %v1260_v24 = vld [vmem:[%s2367_s3] sm:$0xff] }
  0x1c   :  { %1806 = vmatprep.subr.bf16.mxu1 %v1895_v28  ;;  %v151_v59 = vrot.slane %v42_v42, %v2043_v29  ;;  %v144_v60 = vrot.slane %v42_v42, %v2045_v31  ;;  %v595_v61 = vrot.slane %v1638_v47, %v2043_v29  ;;  %v588_v62 = vrot.slane %v1638_v47, %v2045_v31  ;;  %v1905_v47 = vld [vmem:[%s2368_s4 + $0x28] sm:$0xff]  }
  0x1d   :  { %1775 = vmatpush3.bf16.msra.mxu0 %v1892_v20  ;;  %v941_v1 = vrot.slane %v929_v63, %v2003_v3  ;;  %v934_v4 = vrot.slane %v929_v63, %v2001_v2  ;;  %v997_v6 = vrot.slane %v930_v5, %v2003_v3  ;;  %v990_v7 = vrot.slane %v930_v5, %v2001_v2 }
  0x1e   :  { %69 = vbcast.lane.b32.xlu1 %v67_v15, 256  ;;  %62 = vbcast.lane.b32.xlu0 %v60_v16, 256  ;;  %v955_v10 = vrot.slane %v929_v63, %v2019_v8  ;;  %v948_v11 = vrot.slane %v929_v63, %v2021_v9  ;;  %v1011_v12 = vrot.slane %v930_v5, %v2019_v8 }
  0x1f   :  { %1776 = vmatprep.subr.bf16.mxu0 %v1894_v25  ;;  %1807 = vmatpush3.bf16.msra.mxu1 %v1895_v28  ;;  %v1004_v13 = vrot.slane %v930_v5, %v2021_v9  ;;  %v969_v14 = vrot.slane %v929_v63, %v2031_v19  ;;  %v962_v15 = vrot.slane %v929_v63, %v2037_v23 }
  0x20   :  { %1808 = vmatprep.subr.bf16.mxu1 %v1897_v32  ;;  %v1025_v16 = vrot.slane %v930_v5, %v2031_v19  ;;  %v1018_v17 = vrot.slane %v930_v5, %v2037_v23  ;;  %v983_v18 = vrot.slane %v929_v63, %v2043_v29  ;;  %v976_v20 = vrot.slane %v929_v63, %v2045_v31 }
  0x21   :  { %1777 = vmatpush3.bf16.msra.mxu0 %v1894_v25  ;;  %v1261_v25 = vld [vmem:[%s2367_s3 + $0x8] sm:$0xff]  ;;  %v1279_v28 = vrot.slane %v1260_v24, %v2021_v9 }
  0x22   :  { %513 = vbcast.lane.b32.xlu1 %v511_v21, 256  ;;  %506 = vbcast.lane.b32.xlu0 %v504_v22, 256  ;;  %v1039_v21 = vrot.slane %v930_v5, %v2043_v29  ;;  %v1032_v22 = vrot.slane %v930_v5, %v2045_v31 }
  0x23   :  { %1778 = vmatprep.subr.bf16.mxu0 %v1896_v30  ;;  %1809 = vmatpush3.bf16.msra.mxu1 %v1897_v32  ;;  %v1265_v32 = vrot.slane %v1260_v24, %v2001_v2 }
  0x24   :  { %1810 = vmatprep.subr.bf16.mxu1 %v1899_v38 }
  0x25   :  { %1779 = vmatpush3.bf16.msra.mxu0 %v1896_v30  ;;  %v1335_v30 = vrot.slane %v1261_v25, %v2021_v9  ;;  %v1300_v9 = vrot.slane %v1260_v24, %v2031_v19 }
  0x26   :  { %83 = vbcast.lane.b32.xlu1 %v81_v26, 256  ;;  %76 = vbcast.lane.b32.xlu0 %v74_v27, 256  ;;  %v1272_v26 = vrot.slane %v1260_v24, %v2003_v3  ;;  %v1328_v27 = vrot.slane %v1261_v25, %v2003_v3  ;;  %v1293_v3 = vrot.slane %v1260_v24, %v2037_v23 }
  0x27   :  { %1780 = vmatprep.subr.bf16.mxu0 %v1898_v35  ;;  %1811 = vmatpush3.bf16.msra.mxu1 %v1899_v38 }
  0x28   :  { %1812 = vmatprep.subr.bf16.mxu1 %v1901_v43 }
  0x29   :  { %1781 = vmatpush3.bf16.msra.mxu0 %v1898_v35  ;;  %v1342_v35 = vrot.slane %v1261_v25, %v2019_v8 }
  0x2a   :  { %527 = vbcast.lane.b32.xlu1 %v525_v33, 256  ;;  %520 = vbcast.lane.b32.xlu0 %v518_v34, 256  ;;  %v1286_v33 = vrot.slane %v1260_v24, %v2019_v8  ;;  %v1321_v34 = vrot.slane %v1261_v25, %v2001_v2  ;;  %v1307_v2 = vrot.slane %v1260_v24, %v2045_v31 }
  0x2b   :  { %1782 = vmatprep.subr.bf16.mxu0 %v1900_v39  ;;  %1813 = vmatpush3.bf16.msra.mxu1 %v1901_v43  ;;  %v1363_v8 = vrot.slane %v1261_v25, %v2045_v31 }
  0x2c   :  { %1814 = vmatprep.subr.bf16.mxu1 %v1902_v48 }
  0x2d   :  { %1783 = vmatpush3.bf16.msra.mxu0 %v1900_v39 }
  0x2e   :  { %97 = vbcast.lane.b32.xlu1 %v95_v36, 256  ;;  %90 = vbcast.lane.b32.xlu0 %v88_v37, 256  ;;  %v1349_v36 = vrot.slane %v1261_v25, %v2037_v23  ;;  %v1356_v37 = vrot.slane %v1261_v25, %v2031_v19  ;;  %v1370_v19 = vrot.slane %v1261_v25, %v2043_v29  ;;  %v1958_v23 = vmov 1.0|1.0  }
  0x2f   :  { %1832 = vmatprep.subr.bf16.mxu0 %v2067_v46  ;;  %1815 = vmatpush3.bf16.msra.mxu1 %v1902_v48 }
  0x30   :  { %1864 = vmatprep.subr.bf16.mxu1 %v2067_v46 }
  0x32   :  { %541 = vbcast.lane.b32.xlu1 %v539_v40, 256  ;;  %534 = vbcast.lane.b32.xlu0 %v532_v41, 256  ;;  %v2129_v40 = vand.u32 127, %v39_v0  ;;  %v1314_v0 = vrot.slane %v1260_v24, %v2043_v29 }
  0x36   :  { %111 = vbcast.lane.b32.xlu1 %v109_v44, 256  ;;  %104 = vbcast.lane.b32.xlu0 %v102_v45, 256  ;;  %v1904_v44 = vld [vmem:[%s2368_s4 + $0x30] sm:$0xff]  }
  0x3a   :  { %555 = vbcast.lane.b32.xlu1 %v553_v49, 256  ;;  %548 = vbcast.lane.b32.xlu0 %v546_v50, 256  ;;  %v1906_v50 = vld [vmem:[%s2368_s4 + $0x20] sm:$0xff]  }
  0x3e   :  { %125 = vbcast.lane.b32.xlu1 %v123_v51, 256  ;;  %118 = vbcast.lane.b32.xlu0 %v116_v52, 256 }
  0x42   :  { %569 = vbcast.lane.b32.xlu1 %v567_v53, 256  ;;  %562 = vbcast.lane.b32.xlu0 %v560_v54, 256 }
  0x46   :  { %139 = vbcast.lane.b32.xlu1 %v137_v55, 256  ;;  %132 = vbcast.lane.b32.xlu0 %v130_v56, 256  ;;  %v1908_v55 = vld [vmem:[%s2368_s4 + $0x10] sm:$0xff]  }
  0x4a   :  { %583 = vbcast.lane.b32.xlu1 %v581_v57, 256  ;;  %576 = vbcast.lane.b32.xlu0 %v574_v58, 256  ;;  %v1909_v58 = vld [vmem:[%s2368_s4 + $0x8] sm:$0xff]  }
  0x4e   :  { %153 = vbcast.lane.b32.xlu1 %v151_v59, 256  ;;  %146 = vbcast.lane.b32.xlu0 %v144_v60, 256 }
  0x52   :  { %597 = vbcast.lane.b32.xlu1 %v595_v61, 256  ;;  %590 = vbcast.lane.b32.xlu0 %v588_v62, 256  ;;  %v1910_v61 = vld [vmem:[%s2368_s4] sm:$0xff]  }
  0x56   :  { %943 = vbcast.lane.b32.xlu1 %v941_v1, 256  ;;  %936 = vbcast.lane.b32.xlu0 %v934_v4, 256 }
  0x5a   :  { %999 = vbcast.lane.b32.xlu1 %v997_v6, 256  ;;  %992 = vbcast.lane.b32.xlu0 %v990_v7, 256 }
  0x5e   :  { %957 = vbcast.lane.b32.xlu1 %v955_v10, 256  ;;  %950 = vbcast.lane.b32.xlu0 %v948_v11, 256 }
  0x62   :  { %1013 = vbcast.lane.b32.xlu1 %v1011_v12, 256  ;;  %1006 = vbcast.lane.b32.xlu0 %v1004_v13, 256 }
  0x66   :  { %971 = vbcast.lane.b32.xlu1 %v969_v14, 256  ;;  %964 = vbcast.lane.b32.xlu0 %v962_v15, 256 }
  0x6a   :  { %1027 = vbcast.lane.b32.xlu1 %v1025_v16, 256  ;;  %1020 = vbcast.lane.b32.xlu0 %v1018_v17, 256 }
  0x6e   :  { %985 = vbcast.lane.b32.xlu1 %v983_v18, 256  ;;  %978 = vbcast.lane.b32.xlu0 %v976_v20, 256 }
  0x72   :  { %1041 = vbcast.lane.b32.xlu1 %v1039_v21, 256  ;;  %1034 = vbcast.lane.b32.xlu0 %v1032_v22, 256 }
  0x76   :  { %1274 = vbcast.lane.b32.xlu0 %v1272_v26, 256  ;;  %1330 = vbcast.lane.b32.xlu1 %v1328_v27, 256 }
  0x7a   :  { %1281 = vbcast.lane.b32.xlu0 %v1279_v28, 256  ;;  %1337 = vbcast.lane.b32.xlu1 %v1335_v30, 256 }
  0x7e   :  { %1267 = vbcast.lane.b32.xlu0 %v1265_v32, 256  ;;  %1288 = vbcast.lane.b32.xlu1 %v1286_v33, 256 }
  0x82   :  { %1323 = vbcast.lane.b32.xlu0 %v1321_v34, 256  ;;  %1344 = vbcast.lane.b32.xlu1 %v1342_v35, 256 }
  0x86   :  { %1295 = vbcast.lane.b32.xlu0 %v1293_v3, 256  ;;  %1351 = vbcast.lane.b32.xlu1 %v1349_v36, 256 }
  0x88   :  { %v493_v38 = vpop.permute.xlu1 %492  ;;  %v49_v39 = vpop.permute.xlu0 %48 }
  0x89   :  { %vm155_vm0 = vcmp.eq.s32.totalorder %v2129_v40, %v49_v39  ;;  %vm599_vm3 = vcmp.eq.s32.totalorder %v2129_v40, %v493_v38 }
  0x8a   :  { %1302 = vbcast.lane.b32.xlu0 %v1300_v9, 256  ;;  %1358 = vbcast.lane.b32.xlu1 %v1356_v37, 256 }
  0x8c   :  { %v500_v41 = vpop.permute.xlu1 %499  ;;  %v56_v42 = vpop.permute.xlu0 %55 }
  0x8d   :  { %vm600_vm1 = vcmp.eq.s32.totalorder %v2129_v40, %v500_v41  ;;  %vm156_vm2 = vcmp.eq.s32.totalorder %v2129_v40, %v56_v42 }
  0x8e   :  { %vm1621_vm4 = vmpackc.low %vm156_vm2, %vm155_vm0  ;;  %1309 = vbcast.lane.b32.xlu0 %v1307_v2, 256  ;;  %1365 = vbcast.lane.b32.xlu1 %v1363_v8, 256 }
  0x8f   :  { %1784 = vmatprep.mubr.msk.bf16.mxu0 %vm1621_vm4, %v1958_v23  ;;  %vm1663_vm5 = vmpackc.low %vm600_vm1, %vm599_vm3 }
  0x90   :  { %1816 = vmatprep.mubr.msk.bf16.mxu1 %vm1663_vm5, %v1958_v23  ;;  %v70_v31 = vpop.permute.xlu1 %69  ;;  %v63_v43 = vpop.permute.xlu0 %62 }
  0x91   :  { %vm158_vm6 = vcmp.eq.s32.totalorder %v2129_v40, %v70_v31  ;;  %vm157_vm7 = vcmp.eq.s32.totalorder %v2129_v40, %v63_v43 }
  0x92   :  { %vm1623_vm8 = vmpackc.low %vm158_vm6, %vm157_vm7  ;;  %1316 = vbcast.lane.b32.xlu0 %v1314_v0, 256  ;;  %1372 = vbcast.lane.b32.xlu1 %v1370_v19, 256 }
  0x93   :  { %1785 = vmatmul.mubr.msk.bf16.vlgmr.msra.gmra.mxu0 %vm1623_vm8, %v1958_v23 }
  0x94   :  { %v514_v29 = vpop.permute.xlu1 %513  ;;  %v507_v45 = vpop.permute.xlu0 %506  ;;  %1833 = vmatpush3.bf16.msra.mxu0 %v2067_v46 }
  0x95   :  { %vm602_vm9 = vcmp.eq.s32.totalorder %v2129_v40, %v514_v29  ;;  %vm601_vm10 = vcmp.eq.s32.totalorder %v2129_v40, %v507_v45  ;;  %1834 = vmatprep.subr.bf16.mxu0 %v1904_v44 }
  0x96   :  { %vm1665_vm11 = vmpackc.low %vm602_vm9, %vm601_vm10 }
  0x97   :  { %1817 = vmatmul.mubr.msk.bf16.vlgmr.msra.gmra.mxu1 %vm1665_vm11, %v1958_v23 }
  0x98   :  { %v84_v48 = vpop.permute.xlu1 %83  ;;  %v77_v49 = vpop.permute.xlu0 %76  ;;  %1872 = vmatpush3.bf16.msra.mxu1 %v2067_v46  ;;  %1835 = vmatpush3.bf16.msra.mxu0 %v1904_v44  ;;  %v1907_v46 = vld [vmem:[%s2368_s4 + $0x18] sm:$0xff]  }
  0x99   :  { %vm160_vm12 = vcmp.eq.s32.totalorder %v2129_v40, %v84_v48  ;;  %vm159_vm13 = vcmp.eq.s32.totalorder %v2129_v40, %v77_v49  ;;  %1865 = vmatprep.subr.bf16.mxu1 %v1904_v44  ;;  %1836 = vmatprep.subr.bf16.mxu0 %v1905_v47 }
  0x9a   :  { %vm1625_vm14 = vmpackc.low %vm160_vm12, %vm159_vm13 }
  0x9b   :  { %1788 = vmatprep.mubr.msk.bf16.mxu0 %vm1625_vm14, %v1958_v23 }
  0x9c   :  { %v528_v51 = vpop.permute.xlu1 %527  ;;  %v521_v52 = vpop.permute.xlu0 %520  ;;  %1873 = vmatpush3.bf16.msra.mxu1 %v1904_v44  ;;  %1837 = vmatpush3.bf16.msra.mxu0 %v1905_v47 }
  0x9d   :  { %vm604_vm15 = vcmp.eq.s32.totalorder %v2129_v40, %v528_v51  ;;  %vm603_vm0 = vcmp.eq.s32.totalorder %v2129_v40, %v521_v52  ;;  %1866 = vmatprep.subr.bf16.mxu1 %v1905_v47  ;;  %1838 = vmatprep.subr.bf16.mxu0 %v1906_v50 }
  0x9e   :  { %vm1667_vm1 = vmpackc.low %vm604_vm15, %vm603_vm0 }
  0x9f   :  { %1820 = vmatprep.mubr.msk.bf16.mxu1 %vm1667_vm1, %v1958_v23 }
  0xa0   :  { %v98_v53 = vpop.permute.xlu1 %97  ;;  %v91_v54 = vpop.permute.xlu0 %90  ;;  %1874 = vmatpush3.bf16.msra.mxu1 %v1905_v47  ;;  %1839 = vmatpush3.bf16.msra.mxu0 %v1906_v50 }
  0xa1   :  { %vm162_vm2 = vcmp.eq.s32.totalorder %v2129_v40, %v98_v53  ;;  %vm161_vm3 = vcmp.eq.s32.totalorder %v2129_v40, %v91_v54  ;;  %1867 = vmatprep.subr.bf16.mxu1 %v1906_v50  ;;  %1840 = vmatprep.subr.bf16.mxu0 %v1907_v46 }
  0xa2   :  { %vm1627_vm4 = vmpackc.low %vm162_vm2, %vm161_vm3 }
  0xa3   :  { %1789 = vmatmul.mubr.msk.bf16.gmra.mxu0 %vm1627_vm4, %v1958_v23 }
  0xa4   :  { %v542_v56 = vpop.permute.xlu1 %541  ;;  %v535_v57 = vpop.permute.xlu0 %534  ;;  %1875 = vmatpush3.bf16.msra.mxu1 %v1906_v50  ;;  %1841 = vmatpush3.bf16.msra.mxu0 %v1907_v46 }
  0xa5   :  { %vm606_vm5 = vcmp.eq.s32.totalorder %v2129_v40, %v542_v56  ;;  %vm605_vm6 = vcmp.eq.s32.totalorder %v2129_v40, %v535_v57  ;;  %1868 = vmatprep.subr.bf16.mxu1 %v1907_v46  ;;  %1842 = vmatprep.subr.bf16.mxu0 %v1908_v55 }
  0xa6   :  { %vm1669_vm7 = vmpackc.low %vm606_vm5, %vm605_vm6 }
  0xa7   :  { %1821 = vmatmul.mubr.msk.bf16.gmra.mxu1 %vm1669_vm7, %v1958_v23 }
  0xa8   :  { %v112_v59 = vpop.permute.xlu1 %111  ;;  %v105_v60 = vpop.permute.xlu0 %104  ;;  %1876 = vmatpush3.bf16.msra.mxu1 %v1907_v46  ;;  %1843 = vmatpush3.bf16.msra.mxu0 %v1908_v55 }
  0xa9   :  { %vm164_vm8 = vcmp.eq.s32.totalorder %v2129_v40, %v112_v59  ;;  %vm163_vm9 = vcmp.eq.s32.totalorder %v2129_v40, %v105_v60  ;;  %1869 = vmatprep.subr.bf16.mxu1 %v1908_v55  ;;  %1844 = vmatprep.subr.bf16.mxu0 %v1909_v58 }
  0xaa   :  { %vm1629_vm10 = vmpackc.low %vm164_vm8, %vm163_vm9 }
  0xab   :  { %1792 = vmatprep.mubr.msk.bf16.mxu0 %vm1629_vm10, %v1958_v23 }
  0xac   :  { %v556_v62 = vpop.permute.xlu1 %555  ;;  %v549_v63 = vpop.permute.xlu0 %548  ;;  %1877 = vmatpush3.bf16.msra.mxu1 %v1908_v55  ;;  %1845 = vmatpush3.bf16.msra.mxu0 %v1909_v58 }
  0xad   :  { %vm608_vm11 = vcmp.eq.s32.totalorder %v2129_v40, %v556_v62  ;;  %vm607_vm12 = vcmp.eq.s32.totalorder %v2129_v40, %v549_v63  ;;  %1870 = vmatprep.subr.bf16.mxu1 %v1909_v58  ;;  %1846 = vmatprep.subr.bf16.mxu0 %v1910_v61 }
  0xae   :  { %vm1671_vm13 = vmpackc.low %vm608_vm11, %vm607_vm12 }
  0xaf   :  { %1824 = vmatprep.mubr.msk.bf16.mxu1 %vm1671_vm13, %v1958_v23 }
  0xb0   :  { %v126_v1 = vpop.permute.xlu1 %125  ;;  %v119_v4 = vpop.permute.xlu0 %118  ;;  %1878 = vmatpush3.bf16.msra.mxu1 %v1909_v58  ;;  %1847 = vmatpush3.bf16.msra.mxu0 %v1910_v61 }
  0xb1   :  { %vm166_vm14 = vcmp.eq.s32.totalorder %v2129_v40, %v126_v1  ;;  %vm165_vm15 = vcmp.eq.s32.totalorder %v2129_v40, %v119_v4  ;;  %1871 = vmatprep.subr.bf16.mxu1 %v1910_v61 }
  0xb2   :  { %vm1631_vm0 = vmpackc.low %vm166_vm14, %vm165_vm15 }
  0xb3   :  { %1793 = vmatmul.mubr.msk.bf16.gmra.mxu0 %vm1631_vm0, %v1958_v23 }
  0xb4   :  { %v570_v5 = vpop.permute.xlu1 %569  ;;  %v563_v6 = vpop.permute.xlu0 %562  ;;  %1879 = vmatpush3.bf16.msra.mxu1 %v1910_v61 }
  0xb5   :  { %vm610_vm1 = vcmp.eq.s32.totalorder %v2129_v40, %v570_v5  ;;  %vm609_vm2 = vcmp.eq.s32.totalorder %v2129_v40, %v563_v6 }
  0xb6   :  { %vm1673_vm3 = vmpackc.low %vm610_vm1, %vm609_vm2 }
  0xb7   :  { %1825 = vmatmul.mubr.msk.bf16.gmra.mxu1 %vm1673_vm3, %v1958_v23 }
  0xb8   :  { %v140_v7 = vpop.permute.xlu1 %139  ;;  %v133_v10 = vpop.permute.xlu0 %132 }
  0xb9   :  { %vm168_vm4 = vcmp.eq.s32.totalorder %v2129_v40, %v140_v7  ;;  %vm167_vm5 = vcmp.eq.s32.totalorder %v2129_v40, %v133_v10 }
  0xba   :  { %vm1633_vm6 = vmpackc.low %vm168_vm4, %vm167_vm5 }
  0xbb   :  { %1796 = vmatprep.mubr.msk.bf16.mxu0 %vm1633_vm6, %v1958_v23 }
  0xbc   :  { %v584_v11 = vpop.permute.xlu1 %583  ;;  %v577_v12 = vpop.permute.xlu0 %576 }
  0xbd   :  { %vm612_vm7 = vcmp.eq.s32.totalorder %v2129_v40, %v584_v11  ;;  %vm611_vm8 = vcmp.eq.s32.totalorder %v2129_v40, %v577_v12 }
  0xbe   :  { %vm1675_vm9 = vmpackc.low %vm612_vm7, %vm611_vm8 }
  0xbf   :  { %1828 = vmatprep.mubr.msk.bf16.mxu1 %vm1675_vm9, %v1958_v23 }
  0xc0   :  { %v154_v13 = vpop.permute.xlu1 %153  ;;  %v147_v14 = vpop.permute.xlu0 %146 }
  0xc1   :  { %vm170_vm10 = vcmp.eq.s32.totalorder %v2129_v40, %v154_v13  ;;  %vm169_vm11 = vcmp.eq.s32.totalorder %v2129_v40, %v147_v14 }
  0xc2   :  { %vm1635_vm12 = vmpackc.low %vm170_vm10, %vm169_vm11 }
  0xc3   :  { %1797 = vmatmul.mubr.msk.bf16.gmra.mxu0 %vm1635_vm12, %v1958_v23 }
  0xc4   :  { %v598_v15 = vpop.permute.xlu1 %597  ;;  %v591_v16 = vpop.permute.xlu0 %590 }
  0xc5   :  { %vm614_vm13 = vcmp.eq.s32.totalorder %v2129_v40, %v598_v15  ;;  %vm613_vm14 = vcmp.eq.s32.totalorder %v2129_v40, %v591_v16 }
  0xc6   :  { %vm1677_vm15 = vmpackc.low %vm614_vm13, %vm613_vm14 }
  0xc7   :  { %1829 = vmatmul.mubr.msk.bf16.gmra.mxu1 %vm1677_vm15, %v1958_v23 }
  0xc8   :  { %v944_v17 = vpop.permute.xlu1 %943  ;;  %v937_v18 = vpop.permute.xlu0 %936 }
  0xc9   :  { %vm1044_vm0 = vcmp.eq.s32.totalorder %v2129_v40, %v944_v17  ;;  %vm1043_vm1 = vcmp.eq.s32.totalorder %v2129_v40, %v937_v18 }
  0xca   :  { %vm1703_vm2 = vmpackc.low %vm1044_vm0, %vm1043_vm1 }
  0xcb   :  { %1848 = vmatprep.mubr.msk.bf16.mxu0 %vm1703_vm2, %v1958_v23 }
  0xcc   :  { %v1000_v20 = vpop.permute.xlu1 %999  ;;  %v993_v21 = vpop.permute.xlu0 %992 }
  0xcd   :  { %vm1052_vm3 = vcmp.eq.s32.totalorder %v2129_v40, %v1000_v20  ;;  %vm1051_vm4 = vcmp.eq.s32.totalorder %v2129_v40, %v993_v21 }
  0xce   :  { %vm1711_vm5 = vmpackc.low %vm1052_vm3, %vm1051_vm4 }
  0xcf   :  { %1856 = vmatprep.mubr.msk.bf16.mxu1 %vm1711_vm5, %v1958_v23 }
  0xd0   :  { %v958_v22 = vpop.permute.xlu1 %957  ;;  %v951_v24 = vpop.permute.xlu0 %950 }
  0xd1   :  { %vm1046_vm6 = vcmp.eq.s32.totalorder %v2129_v40, %v958_v22  ;;  %vm1045_vm7 = vcmp.eq.s32.totalorder %v2129_v40, %v951_v24 }
  0xd2   :  { %vm1705_vm8 = vmpackc.low %vm1046_vm6, %vm1045_vm7 }
  0xd3   :  { %1849 = vmatmul.mubr.msk.bf16.vlgmr.msra.gmra.mxu0 %vm1705_vm8, %v1958_v23  ;;  %vm1542_vm8 = vcmask 1041409  }
  0xd4   :  { %v1014_v25 = vpop.permute.xlu1 %1013  ;;  %v1007_v26 = vpop.permute.xlu0 %1006 }
  0xd5   :  { %vm1054_vm9 = vcmp.eq.s32.totalorder %v2129_v40, %v1014_v25  ;;  %vm1053_vm10 = vcmp.eq.s32.totalorder %v2129_v40, %v1007_v26 }
  0xd6   :  { %vm1713_vm11 = vmpackc.low %vm1054_vm9, %vm1053_vm10  ;;  %vm1545_vm9 = vcmask 1042434   ;;  %vm1548_vm10 = vcmask 1043459  }
  0xd7   :  { %1857 = vmatmul.mubr.msk.bf16.vlgmr.msra.gmra.mxu1 %vm1713_vm11, %v1958_v23  ;;  %vm1551_vm11 = vcmask 1044484  }
  0xd8   :  { %v972_v27 = vpop.permute.xlu1 %971  ;;  %v965_v28 = vpop.permute.xlu0 %964 }
  0xd9   :  { %vm1048_vm12 = vcmp.eq.s32.totalorder %v2129_v40, %v972_v27  ;;  %vm1047_vm13 = vcmp.eq.s32.totalorder %v2129_v40, %v965_v28 }
  0xda   :  { %vm1707_vm14 = vmpackc.low %vm1048_vm12, %vm1047_vm13  ;;  %vm1554_vm12 = vcmask 1045509   ;;  %vm1557_vm13 = vcmask 1046534  }
  0xdb   :  { %1852 = vmatprep.mubr.msk.bf16.mxu0 %vm1707_vm14, %v1958_v23  ;;  %vm1560_vm14 = vcmask 1047559  }
  0xdc   :  { %v1028_v30 = vpop.permute.xlu1 %1027  ;;  %v1021_v32 = vpop.permute.xlu0 %1020 }
  0xdd   :  { %vm1056_vm15 = vcmp.eq.s32.totalorder %v2129_v40, %v1028_v30  ;;  %vm1055_vm0 = vcmp.eq.s32.totalorder %v2129_v40, %v1021_v32 }
  0xde   :  { %vm1715_vm1 = vmpackc.low %vm1056_vm15, %vm1055_vm0 }
  0xdf   :  { %1860 = vmatprep.mubr.msk.bf16.mxu1 %vm1715_vm1, %v1958_v23 }
  0xe0   :  { %v986_v33 = vpop.permute.xlu1 %985  ;;  %v979_v34 = vpop.permute.xlu0 %978 }
  0xe1   :  { %vm1050_vm2 = vcmp.eq.s32.totalorder %v2129_v40, %v986_v33  ;;  %vm1049_vm3 = vcmp.eq.s32.totalorder %v2129_v40, %v979_v34 }
  0xe2   :  { %vm1709_vm4 = vmpackc.low %vm1050_vm2, %vm1049_vm3 }
  0xe3   :  { %1853 = vmatmul.mubr.msk.bf16.gmra.mxu0 %vm1709_vm4, %v1958_v23 }
  0xe4   :  { %v1042_v35 = vpop.permute.xlu1 %1041  ;;  %v1035_v3 = vpop.permute.xlu0 %1034 }
  0xe5   :  { %vm1058_vm5 = vcmp.eq.s32.totalorder %v2129_v40, %v1042_v35  ;;  %vm1057_vm6 = vcmp.eq.s32.totalorder %v2129_v40, %v1035_v3 }
  0xe6   :  { %vm1717_vm7 = vmpackc.low %vm1058_vm5, %vm1057_vm6 }
  0xe7   :  { %1861 = vmatmul.mubr.msk.bf16.gmra.mxu1 %vm1717_vm7, %v1958_v23 }
 0x153   :  { %v1786_v36 = vpop.f32.mrf.mxu0 }
 0x154   :  { %v384_v0 = vrot.slane %v1786_v36, 4 }
 0x155   :  { %v309_v38 = vpop.f32.mrf.mxu0 }
 0x156   :  { %v372_v43 = vrot.slane %v309_v38, 4  ;;  %v385_v23 = vadd.f32 %v1786_v36, %v384_v0 }
 0x157   :  { %v1818_v9 = vpop.f32.mrf.mxu1  ;;  %v1787_v2 = vpop.f32.mrf.mxu0 }
 0x158   :  { %v829_v41 = vrot.slane %v1818_v9, 4  ;;  %v390_v44 = vrot.slane %v1787_v2, 4  ;;  %v373_v51 = vadd.f32 %v372_v43, %v309_v38  ;;  %v386_v58 = vrot.slane %v385_v23, 2 }
 0x159   :  { %v754_v37 = vpop.f32.mrf.mxu1  ;;  %v312_v19 = vpop.f32.mrf.mxu0 }
 0x15a   :  { %v817_v42 = vrot.slane %v754_v37, 4  ;;  %v830_v40 = vadd.f32 %v1818_v9, %v829_v41  ;;  %v378_v47 = vrot.slane %v312_v19, 4  ;;  %v391_v52 = vadd.f32 %v1787_v2, %v390_v44 }
 0x15b   :  { %v1819_v39 = vpop.f32.mrf.mxu1  ;;  %v374_v60 = vrot.slane %v373_v51, 2  ;;  %v387_v11 = vadd.f32 %v386_v58, %v385_v23 }
 0x15c   :  { %v835_v31 = vrot.slane %v1819_v39, 4  ;;  %v818_v48 = vadd.f32 %v817_v42, %v754_v37  ;;  %v831_v54 = vrot.slane %v830_v40, 2  ;;  %v379_v55 = vadd.f32 %v378_v47, %v312_v19 }
 0x15d   :  { %v757_v8 = vpop.f32.mrf.mxu1  ;;  %v392_v61 = vrot.slane %v391_v52, 2  ;;  %v375_v14 = vadd.f32 %v374_v60, %v373_v51  ;;  %v388_v27 = vrot.slane %v387_v11, 1 }
 0x15e   :  { %v823_v29 = vrot.slane %v757_v8, 4  ;;  %v836_v49 = vadd.f32 %v1819_v39, %v835_v31  ;;  %v819_v56 = vrot.slane %v818_v48, 2  ;;  %v832_v4 = vadd.f32 %v831_v54, %v830_v40 }
 0x15f   :  { %v380_v5 = vrot.slane %v379_v55, 2  ;;  %v393_v15 = vadd.f32 %v392_v61, %v391_v52  ;;  %v376_v34 = vrot.slane %v375_v14, 1  ;;  %v389_v19 = vadd.f32 %v388_v27, %v387_v11 }
 0x160   :  { %v824_v46 = vadd.f32 %v823_v29, %v757_v8  ;;  %v837_v59 = vrot.slane %v836_v49, 2  ;;  %v820_v6 = vadd.f32 %v819_v56, %v818_v48  ;;  %v833_v21 = vrot.slane %v832_v4, 1 }
 0x161   :  { %v381_v22 = vadd.f32 %v380_v5, %v379_v55  ;;  %v394_v35 = vrot.slane %v393_v15, 1 }
 0x162   :  { %v825_v62 = vrot.slane %v824_v46, 2  ;;  %v838_v12 = vadd.f32 %v837_v59, %v836_v49  ;;  %v821_v24 = vrot.slane %v820_v6, 1  ;;  %v834_v8 = vadd.f32 %v833_v21, %v832_v4 }
 0x163   :  { %v1790_v45 = vpop.f32.mrf.mxu0  ;;  %v382_v41 = vrot.slane %v381_v22, 1  ;;  %v395_v40 = vadd.f32 %v394_v35, %v393_v15 }
 0x164   :  { %v408_v63 = vrot.slane %v1790_v45, 4  ;;  %v826_v16 = vadd.f32 %v825_v62, %v824_v46  ;;  %v839_v28 = vrot.slane %v838_v12, 1  ;;  %v822_v42 = vadd.f32 %v821_v24, %v820_v6 }
 0x165   :  { %v325_v53 = vpop.f32.mrf.mxu0  ;;  %v383_v54 = vadd.f32 %v382_v41, %v381_v22 }
 0x166   :  { %v396_v7 = vrot.slane %v325_v53, 4  ;;  %v409_v17 = vadd.f32 %v1790_v45, %v408_v63  ;;  %v827_v3 = vrot.slane %v826_v16, 1  ;;  %v840_v31 = vadd.f32 %v839_v28, %v838_v12 }
 0x167   :  { %v1822_v50 = vpop.f32.mrf.mxu1  ;;  %v1791_v1 = vpop.f32.mrf.mxu0  ;;  %v377_v45 = vadd.f32 %v376_v34, %v375_v14 }
 0x168   :  { %v853_v13 = vrot.slane %v1822_v50, 4  ;;  %v414_v18 = vrot.slane %v1791_v1, 4  ;;  %v397_v25 = vadd.f32 %v396_v7, %v325_v53  ;;  %v410_v36 = vrot.slane %v409_v17, 2 }
 0x169   :  { %v770_v57 = vpop.f32.mrf.mxu1  ;;  %v328_v20 = vpop.f32.mrf.mxu0  ;;  %v828_v47 = vadd.f32 %v827_v3, %v826_v16  ;;  %v2230_v53 = vadd.f32 %v834_v8, %v389_v19  ;;  %v2232_v55 = vadd.f32 %v822_v42, %v377_v45  ;;  %v2234_v58 = vadd.f32 %v840_v31, %v395_v40 }
 0x16a   :  { %v854_v30 = vadd.f32 %v1822_v50, %v853_v13  ;;  %v841_v32 = vrot.slane %v770_v57, 4  ;;  %v415_v9 = vadd.f32 %v1791_v1, %v414_v18  ;;  %v402_v37 = vrot.slane %v328_v20, 4  ;;  %v2240_v31 = vpop.permute.xlu1 %1330 }
 0x16b   :  { %v1823_v10 = vpop.f32.mrf.mxu1  ;;  %v398_v0 = vrot.slane %v397_v25, 2  ;;  %v411_v48 = vadd.f32 %v410_v36, %v409_v17  ;;  %v2236_v62 = vadd.f32 %v828_v47, %v383_v54  ;;  %v2238_v17 = vpop.permute.xlu0 %1274 }
 0x16c   :  { %v859_v38 = vrot.slane %v1823_v10, 4  ;;  %v855_v43 = vrot.slane %v854_v30, 2  ;;  %v842_v44 = vadd.f32 %v841_v32, %v770_v57  ;;  %v416_v23 = vrot.slane %v415_v9, 2 }
 0x16d   :  { %v773_v26 = vpop.f32.mrf.mxu1  ;;  %v403_v49 = vadd.f32 %v402_v37, %v328_v20  ;;  %v399_v56 = vadd.f32 %v398_v0, %v397_v25  ;;  %v412_v63 = vrot.slane %v411_v48, 1 }
 0x16e   :  { %v847_v39 = vrot.slane %v773_v26, 4  ;;  %v860_v50 = vadd.f32 %v1823_v10, %v859_v38  ;;  %v856_v57 = vadd.f32 %v855_v43, %v854_v30  ;;  %v843_v59 = vrot.slane %v842_v44, 2 }
 0x16f   :  { %v417_v5 = vadd.f32 %v416_v23, %v415_v9  ;;  %v404_v6 = vrot.slane %v403_v49, 2  ;;  %v400_v13 = vrot.slane %v399_v56, 1  ;;  %v413_v24 = vadd.f32 %v412_v63, %v411_v48  ;;  %v2242_v43 = vpop.permute.xlu0 %1281 }
 0x170   :  { %v848_v51 = vadd.f32 %v847_v39, %v773_v26  ;;  %v861_v7 = vrot.slane %v860_v50, 2  ;;  %v857_v18 = vrot.slane %v856_v57, 1  ;;  %v844_v20 = vadd.f32 %v843_v59, %v842_v44 }
 0x171   :  { %v418_v28 = vrot.slane %v417_v5, 1  ;;  %v405_v30 = vadd.f32 %v404_v6, %v403_v49  ;;  %v401_v37 = vadd.f32 %v400_v13, %v399_v56  ;;  %v2246_v13 = vpop.permute.xlu1 %1337 }
 0x172   :  { %v849_v10 = vrot.slane %v848_v51, 2  ;;  %v862_v32 = vadd.f32 %v861_v7, %v860_v50  ;;  %v858_v38 = vadd.f32 %v857_v18, %v856_v57  ;;  %v845_v39 = vrot.slane %v844_v20, 1 }
 0x173   :  { %v1794_v33 = vpop.f32.mrf.mxu0  ;;  %v419_v44 = vadd.f32 %v418_v28, %v417_v5 }
 0x174   :  { %v432_v60 = vrot.slane %v1794_v33, 4  ;;  %v850_v34 = vadd.f32 %v849_v10, %v848_v51  ;;  %v863_v45 = vrot.slane %v862_v32, 1  ;;  %v2244_v50 = vadd.f32 %v858_v38, %v413_v24 }
 0x175   :  { %v341_v2 = vpop.f32.mrf.mxu0  ;;  %v846_v51 = vadd.f32 %v845_v39, %v844_v20 }
 0x176   :  { %v420_v14 = vrot.slane %v341_v2, 4  ;;  %v433_v21 = vadd.f32 %v1794_v33, %v432_v60  ;;  %v864_v63 = vadd.f32 %v863_v45, %v862_v32 }
 0x177   :  { %v1826_v29 = vpop.f32.mrf.mxu1  ;;  %v1795_v52 = vpop.f32.mrf.mxu0 }
 0x178   :  { %v877_v1 = vrot.slane %v1826_v29, 4  ;;  %v438_v15 = vrot.slane %v1795_v52, 4  ;;  %v421_v35 = vadd.f32 %v420_v14, %v341_v2  ;;  %v434_v8 = vrot.slane %v433_v21, 2  ;;  %v1268_v14 = vpop.permute.xlu0 %1267 }
 0x179   :  { %v786_v46 = vpop.f32.mrf.mxu1  ;;  %v344_v11 = vpop.f32.mrf.mxu0  ;;  %v851_v2 = vrot.slane %v850_v34, 1 }
 0x17a   :  { %v865_v4 = vrot.slane %v786_v46, 4  ;;  %v878_v25 = vadd.f32 %v1826_v29, %v877_v1  ;;  %v426_v26 = vrot.slane %v344_v11, 4  ;;  %v439_v3 = vadd.f32 %v1795_v52, %v438_v15 }
 0x17b   :  { %v1827_v61 = vpop.f32.mrf.mxu1  ;;  %v406_v29 = vrot.slane %v405_v30, 1  ;;  %v422_v47 = vrot.slane %v421_v35, 2  ;;  %v435_v57 = vadd.f32 %v434_v8, %v433_v21  ;;  %v852_v1 = vadd.f32 %v851_v2, %v850_v34 }
 0x17c   :  { %v883_v16 = vrot.slane %v1827_v61, 4  ;;  %v866_v27 = vadd.f32 %v865_v4, %v786_v46  ;;  %v879_v42 = vrot.slane %v878_v25, 2  ;;  %v427_v33 = vadd.f32 %v426_v26, %v344_v11 }
 0x17d   :  { %v789_v12 = vpop.f32.mrf.mxu1  ;;  %v440_v48 = vrot.slane %v439_v3, 2  ;;  %v423_v7 = vadd.f32 %v422_v47, %v421_v35  ;;  %v407_v15 = vadd.f32 %v406_v29, %v405_v30  ;;  %v1324_v29 = vpop.permute.xlu0 %1323 }
 0x17e   :  { %v871_v22 = vrot.slane %v789_v12, 4  ;;  %v884_v36 = vadd.f32 %v1827_v61, %v883_v16  ;;  %v867_v0 = vrot.slane %v866_v27, 2  ;;  %v880_v59 = vadd.f32 %v879_v42, %v878_v25 }
 0x17f   :  { %v428_v60 = vrot.slane %v427_v33, 2  ;;  %v441_v10 = vadd.f32 %v440_v48, %v439_v3  ;;  %v2248_v16 = vadd.f32 %v846_v51, %v401_v37  ;;  %v2252_v28 = vadd.f32 %v852_v1, %v407_v15 }
 0x180   :  { %v872_v9 = vadd.f32 %v871_v22, %v789_v12  ;;  %v885_v23 = vrot.slane %v884_v36, 2  ;;  %v868_v61 = vadd.f32 %v867_v0, %v866_v27  ;;  %v436_v22 = vrot.slane %v435_v57, 1 }
 0x181   :  { %v881_v24 = vrot.slane %v880_v59, 1  ;;  %v429_v25 = vadd.f32 %v428_v60, %v427_v33  ;;  %v2250_v27 = vadd.f32 %v864_v63, %v419_v44  ;;  %v424_v35 = vrot.slane %v423_v7, 1  ;;  %v1289_v44 = vpop.permute.xlu1 %1288 }
 0x182   :  { %v873_v49 = vrot.slane %v872_v9, 2  ;;  %v886_v11 = vadd.f32 %v885_v23, %v884_v36  ;;  %v869_v26 = vrot.slane %v868_v61, 1  ;;  %v442_v3 = vrot.slane %v441_v10, 1 }
 0x183   :  { %v1798_v41 = vpop.f32.mrf.mxu0  ;;  %v437_v42 = vadd.f32 %v436_v22, %v435_v57  ;;  %v882_v0 = vadd.f32 %v881_v24, %v880_v59  ;;  %v430_v33 = vrot.slane %v429_v25, 1  ;;  %v425_v48 = vadd.f32 %v424_v35, %v423_v7 }
 0x184   :  { %v456_v19 = vrot.slane %v1798_v41, 4  ;;  %v874_v12 = vadd.f32 %v873_v49, %v872_v9  ;;  %v887_v36 = vrot.slane %v886_v11, 1  ;;  %v443_v23 = vadd.f32 %v442_v3, %v441_v10 }
 0x185   :  { %v357_v40 = vpop.f32.mrf.mxu0  ;;  %v2256_v57 = vadd.f32 %v882_v0, %v437_v42  ;;  %v431_v59 = vadd.f32 %v430_v33, %v429_v25 }
 0x186   :  { %v457_v52 = vadd.f32 %v1798_v41, %v456_v19  ;;  %v444_v46 = vrot.slane %v357_v40, 4  ;;  %v875_v9 = vrot.slane %v874_v12, 1  ;;  %v870_v19 = vadd.f32 %v869_v26, %v868_v61 }
 0x187   :  { %v1799_v54 = vpop.f32.mrf.mxu0  ;;  %v1830_v56 = vpop.f32.mrf.mxu1  ;;  %v888_v49 = vadd.f32 %v887_v36, %v886_v11 }
 0x188   :  { %v462_v4 = vrot.slane %v1799_v54, 4  ;;  %v901_v5 = vrot.slane %v1830_v56, 4  ;;  %v458_v18 = vrot.slane %v457_v52, 2  ;;  %v445_v20 = vadd.f32 %v444_v46, %v357_v40 }
 0x189   :  { %v802_v6 = vpop.f32.mrf.mxu1  ;;  %v360_v30 = vpop.f32.mrf.mxu0  ;;  %v876_v51 = vadd.f32 %v875_v9, %v874_v12  ;;  %v2258_v61 = vadd.f32 %v870_v19, %v425_v48  ;;  %v2263_v11 = vadd.f32 %v888_v49, %v443_v23 }
 0x18a   :  { %v463_v32 = vadd.f32 %v1799_v54, %v462_v4  ;;  %v902_v34 = vadd.f32 %v1830_v56, %v901_v5  ;;  %v459_v38 = vadd.f32 %v458_v18, %v457_v52  ;;  %v446_v39 = vrot.slane %v445_v20, 2  ;;  %v1345_v18 = vpop.permute.xlu1 %1344 }
 0x18b   :  { %v1831_v21 = vpop.f32.mrf.mxu1  ;;  %v889_v8 = vrot.slane %v802_v6, 4  ;;  %v450_v40 = vrot.slane %v360_v30, 4  ;;  %v2265_v12 = vadd.f32 %v876_v51, %v431_v59 }
 0x18c   :  { %v907_v41 = vrot.slane %v1831_v21, 4  ;;  %v464_v45 = vrot.slane %v463_v32, 2  ;;  %v903_v2 = vrot.slane %v902_v34, 2  ;;  %v460_v46 = vrot.slane %v459_v38, 1 }
 0x18d   :  { %v805_v37 = vpop.f32.mrf.mxu1  ;;  %v2254_v54 = vadd.f32 %v446_v39, %v445_v20  ;;  %v890_v52 = vadd.f32 %v889_v8, %v802_v6  ;;  %v451_v5 = vadd.f32 %v450_v40, %v360_v30  ;;  %v2267_v20 = vpop.permute.xlu0 %1295 }
 0x18e   :  { %v895_v47 = vrot.slane %v805_v37, 4  ;;  %v908_v56 = vadd.f32 %v1831_v21, %v907_v41  ;;  %v2261_v1 = vadd.f32 %v464_v45, %v463_v32  ;;  %v904_v4 = vadd.f32 %v903_v2, %v902_v34  ;;  %v2275_v48 = vpop.permute.xlu1 %1351 }
 0x18f   :  { %v2269_v21 = vadd.f32 %v460_v46, %v459_v38  ;;  %v448_v22 = vrot.slane %v2254_v54, 1 }
 0x190   :  { %v896_v7 = vadd.f32 %v895_v47, %v805_v37  ;;  %v909_v24 = vrot.slane %v908_v56, 2  ;;  %v466_v36 = vrot.slane %v2261_v1, 1  ;;  %v905_v9 = vrot.slane %v904_v4, 1 }
 0x191   :  { %v2277_v59 = vpop.permute.xlu0 %1302 }
 0x192   :  { %v897_v30 = vrot.slane %v896_v7, 2  ;;  %v910_v33 = vadd.f32 %v909_v24, %v908_v56 }
 0x193   :  { %v1850_v60 = vpop.f32.mrf.mxu0 }
 0x194   :  { %v1376_v63 = vmul.f32 %v1850_v60, %v2242_v43  ;;  %v891_v43 = vrot.slane %v890_v52, 2  ;;  %v898_v23 = vadd.f32 %v897_v30, %v896_v7 }
 0x195   :  { %v1197_v10 = vpop.f32.mrf.mxu0 }
 0x196   :  { %v1402_v6 = vrot.slane %v1376_v63, 4  ;;  %v1374_v15 = vmul.f32 %v1268_v14, %v1197_v10  ;;  %v452_v14 = vrot.slane %v451_v5, 2  ;;  %v892_v0 = vadd.f32 %v891_v43, %v890_v52 }
 0x197   :  { %v1851_v25 = vpop.f32.mrf.mxu0  ;;  %v1858_v26 = vpop.f32.mrf.mxu1 }
 0x198   :  { %v1403_v32 = vadd.f32 %v1402_v6, %v1376_v63  ;;  %v1390_v34 = vrot.slane %v1374_v15, 4  ;;  %v1377_v35 = vmul.f32 %v1851_v25, %v1289_v44  ;;  %v1384_v3 = vmul.f32 %v1858_v26, %v2246_v13 }
 0x199   :  { %v1200_v37 = vpop.f32.mrf.mxu0  ;;  %v1229_v39 = vpop.f32.mrf.mxu1  ;;  %v453_v43 = vadd.f32 %v452_v14, %v451_v5  ;;  %v893_v24 = vrot.slane %v892_v0, 1  ;;  %v911_v25 = vrot.slane %v910_v33, 1  ;;  %v449_v14 = vadd.f32 %v448_v22, %v2254_v54 }
 0x19a   :  { %v1404_v38 = vrot.slane %v1403_v32, 2  ;;  %v1391_v8 = vadd.f32 %v1390_v34, %v1374_v15  ;;  %v1408_v41 = vrot.slane %v1377_v35, 4  ;;  %v1450_v42 = vrot.slane %v1384_v3, 4  ;;  %v1310_v5 = vpop.permute.xlu0 %1309 }
 0x19b   :  { %v1375_v19 = vmul.f32 %v2238_v17, %v1200_v37  ;;  %v1382_v45 = vmul.f32 %v1324_v29, %v1229_v39  ;;  %v1859_v2 = vpop.f32.mrf.mxu1  ;;  %v2280_v39 = vpop.permute.xlu1 %1358 }
 0x19c   :  { %v1405_v44 = vadd.f32 %v1404_v38, %v1403_v32  ;;  %v1392_v40 = vrot.slane %v1391_v8, 2  ;;  %v1409_v13 = vadd.f32 %v1408_v41, %v1377_v35  ;;  %v1451_v47 = vadd.f32 %v1450_v42, %v1384_v3 }
 0x19d   :  { %v1396_v49 = vrot.slane %v1375_v19, 4  ;;  %v1438_v51 = vrot.slane %v1382_v45, 4  ;;  %v1385_v46 = vmul.f32 %v1859_v2, %v1345_v18  ;;  %v1232_v60 = vpop.f32.mrf.mxu1  ;;  %v906_v35 = vadd.f32 %v905_v9, %v904_v4  ;;  %v2287_v4 = vld [vmem:[%s2369_s5] ss:$0 sm:$0xff]  ;;  %s1959_s5 = smov [#allocation5]  }
 0x19e   :  { %v1406_v63 = vrot.slane %v1405_v44, 1  ;;  %v1393_v52 = vadd.f32 %v1392_v40, %v1391_v8  ;;  %v1410_v56 = vrot.slane %v1409_v13, 2  ;;  %v1452_v10 = vrot.slane %v1451_v47, 2  ;;  %s1585_s8 = sshll.u32 %s1959_s5, 4  ;;  %s1586_s8 = int_to_ptr.vmem [resolvable:$true] %s1585_s8 }
 0x19f   :  { %v1397_v17 = vadd.f32 %v1396_v49, %v1375_v19  ;;  %v1439_v29 = vadd.f32 %v1438_v51, %v1382_v45  ;;  %v1456_v6 = vrot.slane %v1385_v46, 4  ;;  %v1383_v15 = vmul.f32 %v2240_v31, %v1232_v60  ;;  %s1931_s9 = scalar_lea.vmem %s1586_s8, 256  ;;  %p1936_p6 = scmp.lt.s32.totalorder %s1586_s8, %s1586_s8 }
 0x1a0   :  { %v1407_v26 = vadd.f32 %v1406_v63, %v1405_v44  ;;  %v1394_v7 = vrot.slane %v1393_v52, 1  ;;  %v1411_v32 = vadd.f32 %v1410_v56, %v1409_v13  ;;  %v899_v3 = vrot.slane %v898_v23, 1  ;;  %p1932_p5 = scmp.ne.s32.totalorder %s1586_s8, %s1931_s9  ;;  %p1937_p7 = scmp.lt.s32.totalorder %s1931_s9, %s1931_s9 }
 0x1a1   :  { %v1398_v34 = vrot.slane %v1397_v17, 2  ;;  %v1444_v18 = vrot.slane %v1383_v15, 4  ;;  %v1453_v30 = vadd.f32 %v1452_v10, %v1451_v47  ;;  %v1440_v37 = vrot.slane %v1439_v29, 2 }
 0x1a2   :  { %v1488_v38 = vadd.f32 %v1407_v26, %v2230_v53  ;;  %v1457_v41 = vadd.f32 %v1456_v6, %v1385_v46  ;;  %v454_v19 = vrot.slane %v453_v43, 1  ;;  %v894_v45 = vadd.f32 %v893_v24, %v892_v0  ;;  %v1366_v6 = vpop.permute.xlu1 %1365  ;;  %p1938_p8 = por %p1937_p7, %p1936_p6 }
 0x1a3   :  { %v1399_v8 = vadd.f32 %v1398_v34, %v1397_v17  ;;  %v1445_v42 = vadd.f32 %v1444_v18, %v1383_v15  ;;  %v1854_v31 = vpop.f32.mrf.mxu0  ;;  %v912_v2 = vadd.f32 %v911_v25, %v910_v33  ;;  %v1395_v9 = vadd.f32 %v1394_v7, %v1393_v52  ;;  %v1317_v15 = vpop.permute.xlu0 %1316 }
 0x1a4   :  { %v1412_v44 = vrot.slane %v1411_v32, 1  ;;  %v467_v47 = vadd.f32 %v466_v36, %v2261_v1  ;;  %v2293_v49 = vadd.f32 %v906_v35, %v2269_v21  ;;  %v900_v54 = vadd.f32 %v899_v3, %v898_v23  ;;  %p1939_p9 = pnand %p1938_p8, %p1932_p5 }
 0x1a5   :  { %v1400_v40 = vrot.slane %v1399_v8, 1  ;;  %v1446_v13 = vrot.slane %v1445_v42, 2  ;;  %v1213_v53 = vpop.f32.mrf.mxu0  ;;  %v1454_v22 = vrot.slane %v1453_v30, 1  ;;  %v2296_v0 = vadd.f32 %v2287_v4, %v1488_v38 }
 0x1a6   :  { %v1441_v51 = vadd.f32 %v1440_v37, %v1439_v29  ;;  %v1458_v46 = vrot.slane %v1457_v41, 2  ;;  %v455_v63 = vadd.f32 %v454_v19, %v453_v43  ;;  %v2298_v52 = vadd.f32 %v894_v45, %v449_v14 }
 0x1a7   :  { %v1401_v33 = vadd.f32 %v1400_v40, %v1399_v8  ;;  %v1855_v60 = vpop.f32.mrf.mxu0  ;;  %v1380_v56 = vmul.f32 %v1854_v31, %v1310_v5  ;;  %v1378_v10 = vmul.f32 %v2267_v20, %v1213_v53  ;;  %v1862_v17 = vpop.f32.mrf.mxu1  ;;  %v2301_v1 = vadd.f32 %v912_v2, %v467_v47 }
 0x1a8   :  { %v1486_v21 = vadd.f32 %v1395_v9, %v2232_v55  ;;  %v1413_v36 = vadd.f32 %v1412_v44, %v1411_v32  ;;  %v1447_v23 = vadd.f32 %v1446_v13, %v1445_v42  ;;  %v2304_v24 = vadd.f32 %v900_v54, %v455_v63  ;;  %v1373_v53 = vpop.permute.xlu1 %1372 }
 0x1a9   :  { %v1455_v29 = vadd.f32 %v1454_v22, %v1453_v30  ;;  %v1426_v25 = vrot.slane %v1380_v56, 4  ;;  %v1414_v26 = vrot.slane %v1378_v10, 4  ;;  %v1216_v43 = vpop.f32.mrf.mxu0  ;;  %v1544_v7 = vrot.slane %v2296_v0, 6  ;;  %v1245_v32 = vpop.f32.mrf.mxu1 }
 0x1aa   :  { %v1487_v34 = vadd.f32 %v1401_v33, %v2236_v62  ;;  %v1442_v20 = vrot.slane %v1441_v51, 1  ;;  %v1459_v18 = vadd.f32 %v1458_v46, %v1457_v41  ;;  %v1388_v37 = vmul.f32 %v1862_v17, %v1366_v6 }
 0x1ab   :  { %v1427_v35 = vadd.f32 %v1426_v25, %v1380_v56  ;;  %v1415_v3 = vadd.f32 %v1414_v26, %v1378_v10  ;;  %v1381_v55 = vmul.f32 %v1855_v60, %v1317_v15  ;;  %v1509_v38 = vadd.f32 %v2287_v4, %v1486_v21 }
 0x1ac   :  { %v1489_v8 = vadd.f32 %v1413_v36, %v2234_v58  ;;  %v1448_v30 = vrot.slane %v1447_v23, 1  ;;  %v1379_v42 = vmul.f32 %v2277_v59, %v1216_v43  ;;  %v1474_v14 = vrot.slane %v1388_v37, 4  ;;  %v1863_v58 = vpop.f32.mrf.mxu1 }
 0x1ad   :  { %v1428_v31 = vrot.slane %v1427_v35, 2  ;;  %v1416_v5 = vrot.slane %v1415_v3, 2  ;;  %v1432_v19 = vrot.slane %v1381_v55, 4  ;;  %v1496_v62 = vadd.f32 %v1455_v29, %v2256_v57 }
 0x1ae   :  { %v1443_v41 = vadd.f32 %v1442_v20, %v1441_v51  ;;  %v1460_v45 = vrot.slane %v1459_v18, 1  ;;  %v1420_v2 = vrot.slane %v1379_v42, 4  ;;  %v1510_v9 = vadd.f32 %v2287_v4, %v1487_v34 }
 0x1af   :  { %v1429_v44 = vadd.f32 %v1428_v31, %v1427_v35  ;;  %v1417_v40 = vadd.f32 %v1416_v5, %v1415_v3  ;;  %v1475_v13 = vadd.f32 %v1474_v14, %v1388_v37  ;;  %v2314_v47 = vadd.f32 %v2287_v4, %v1489_v8 }
 0x1b0   :  { %v1449_v59 = vadd.f32 %v1448_v30, %v1447_v23  ;;  %v1433_v54 = vadd.f32 %v1432_v19, %v1381_v55  ;;  %v1421_v22 = vadd.f32 %v1420_v2, %v1379_v42  ;;  %v1386_v51 = vmul.f32 %v2275_v48, %v1245_v32  ;;  %v1248_v23 = vpop.f32.mrf.mxu1 }
 0x1b1   :  { %v1430_v33 = vrot.slane %v1429_v44, 1  ;;  %v1418_v46 = vrot.slane %v1417_v40, 1  ;;  %v1476_v57 = vrot.slane %v1475_v13, 2  ;;  %v2318_v60 = vadd.f32 %v2287_v4, %v1496_v62 }
 0x1b2   :  { %v1434_v63 = vrot.slane %v1433_v54, 2  ;;  %v1422_v56 = vrot.slane %v1421_v22, 2  ;;  %v1389_v10 = vmul.f32 %v1863_v58, %v1373_v53  ;;  %v1541_v17 = vrot.slane %v1510_v9, 7 }
 0x1b3   :  { %v1494_v21 = vadd.f32 %v1443_v41, %v2258_v61  ;;  %v1431_v36 = vadd.f32 %v1430_v33, %v1429_v44  ;;  %v1419_v6 = vadd.f32 %v1418_v46, %v1417_v40  ;;  %v1461_v15 = vadd.f32 %v1460_v45, %v1459_v18 }
 0x1b4   :  { %v1435_v29 = vadd.f32 %v1434_v63, %v1433_v54  ;;  %v1423_v25 = vadd.f32 %v1422_v56, %v1421_v22  ;;  %v1462_v26 = vrot.slane %v1386_v51, 4  ;;  %v1495_v48 = vadd.f32 %v1449_v59, %v2265_v12 }
 0x1b5   :  { %v1490_v43 = vadd.f32 %v1419_v6, %v2248_v16  ;;  %v1477_v34 = vadd.f32 %v1476_v57, %v1475_v13  ;;  %v1480_v20 = vrot.slane %v1389_v10, 4  ;;  %v1387_v61 = vmul.f32 %v2280_v39, %v1248_v23 }
 0x1b6   :  { %v1436_v35 = vrot.slane %v1435_v29, 1  ;;  %v1424_v3 = vrot.slane %v1423_v25, 1  ;;  %v1463_v37 = vadd.f32 %v1462_v26, %v1386_v51  ;;  %v1543_v55 = vsel %vm1542_vm8, %v1541_v17, %v1509_v38 }
 0x1b7   :  { %v1492_v18 = vadd.f32 %v1431_v36, %v2244_v50  ;;  %v1513_v32 = vadd.f32 %v2287_v4, %v1490_v43  ;;  %v1481_v8 = vadd.f32 %v1480_v20, %v1389_v10  ;;  %v1468_v42 = vrot.slane %v1387_v61, 4 }
 0x1b8   :  { %v1437_v12 = vadd.f32 %v1436_v35, %v1435_v29  ;;  %v1425_v30 = vadd.f32 %v1424_v3, %v1423_v25  ;;  %v1464_v16 = vrot.slane %v1463_v37, 2  ;;  %v1547_v31 = vrot.slane %v2314_v47, 5 }
 0x1b9   :  { %v1518_v5 = vadd.f32 %v2287_v4, %v1495_v48  ;;  %v1478_v14 = vrot.slane %v1477_v34, 1  ;;  %v1482_v19 = vrot.slane %v1481_v8, 2  ;;  %v1469_v50 = vadd.f32 %v1468_v42, %v1387_v61 }
 0x1ba   :  { %v1493_v39 = vadd.f32 %v1437_v12, %v2250_v27  ;;  %v1491_v38 = vadd.f32 %v1425_v30, %v2252_v28  ;;  %v1465_v62 = vadd.f32 %v1464_v16, %v1463_v37  ;;  %v1546_v41 = vsel %vm1545_vm9, %v1544_v7, %v1543_v55 }
 0x1bb   :  { %v1515_v45 = vadd.f32 %v2287_v4, %v1492_v18  ;;  %v1550_v2 = vrot.slane %v1513_v32, 4  ;;  %v1483_v9 = vadd.f32 %v1482_v19, %v1481_v8  ;;  %v1470_v53 = vrot.slane %v1469_v50, 2 }
 0x1bc   :  { %v1516_v44 = vadd.f32 %v2287_v4, %v1493_v39  ;;  %v1514_v40 = vadd.f32 %v2287_v4, %v1491_v38  ;;  %v1466_v13 = vrot.slane %v1465_v62, 1  ;;  %v1497_v27 = vadd.f32 %v1461_v15, %v2263_v11 }
 0x1bd   :  { %v1562_v58 = vrot.slane %v1518_v5, 7  ;;  %v1479_v28 = vadd.f32 %v1478_v14, %v1477_v34  ;;  %v1484_v47 = vrot.slane %v1483_v9, 1  ;;  %v1549_v59 = vsel %vm1548_vm10, %v1547_v31, %v1546_v41 }
 0x1be   :  { %v1553_v0 = vrot.slane %v1514_v40, 3  ;;  %v1467_v54 = vadd.f32 %v1466_v13, %v1465_v62  ;;  %v1471_v7 = vadd.f32 %v1470_v53, %v1469_v50  ;;  %v1517_v22 = vadd.f32 %v2287_v4, %v1494_v21 }
 0x1bf   :  { %v1556_v33 = vrot.slane %v1515_v45, 2  ;;  %v1552_v46 = vsel %vm1551_vm11, %v1550_v2, %v1549_v59  ;;  %v1485_v57 = vadd.f32 %v1484_v47, %v1483_v9  ;;  %v1559_v51 = vrot.slane %v1516_v44, 1 }
 0x1c0   :  { %v1498_v63 = vadd.f32 %v1467_v54, %v2298_v52  ;;  %v1472_v56 = vrot.slane %v1471_v7, 1  ;;  %v1555_v11 = vsel %vm1554_vm12, %v1553_v0, %v1552_v46  ;;  %v1520_v10 = vadd.f32 %v2287_v4, %v1497_v27 }
 0x1c1   :  { %v1563_v17 = vsel %vm1542_vm8, %v1562_v58, %v1517_v22  ;;  %v1500_v36 = vadd.f32 %v1479_v28, %v2293_v49  ;;  %v1558_v6 = vsel %vm1557_vm13, %v1556_v33, %v1555_v11  ;;  %v1501_v23 = vadd.f32 %v1485_v57, %v2301_v1 }
 0x1c2   :  { %v1521_v21 = vadd.f32 %v2287_v4, %v1498_v63  ;;  %v1473_v15 = vadd.f32 %v1472_v56, %v1471_v7  ;;  %v1561_v29 = vsel %vm1560_vm14, %v1559_v51, %v1558_v6  ;;  %v1564_v52 = vrot.slane %v2318_v60, 6 }
 0x1c3   :  { %1578 = vst [vmem:[#allocation5] sm:$0xff] %v1561_v29  ;;  %v1523_v48 = vadd.f32 %v2287_v4, %v1500_v36  ;;  %v1566_v49 = vrot.slane %v1520_v10, 5  ;;  %v1524_v34 = vadd.f32 %v2287_v4, %v1501_v23 }
 0x1c4   :  { %v1499_v25 = vadd.f32 %v1473_v15, %v2304_v24  ;;  %v1565_v26 = vsel %vm1545_vm9, %v1564_v52, %v1563_v17  ;;  %v1568_v43 = vrot.slane %v1521_v21, 4 }
 0x1c5   :  { %v1567_v1 = vsel %vm1548_vm10, %v1566_v49, %v1565_v26  ;;  %v1572_v3 = vrot.slane %v1523_v48, 2  ;;  %v1574_v37 = vrot.slane %v1524_v34, 1 }
 0x1c6   :  { %v1522_v20 = vadd.f32 %v2287_v4, %v1499_v25  ;;  %v1569_v60 = vsel %vm1551_vm11, %v1568_v43, %v1567_v1 }
 0x1c8   :  { %v1570_v35 = vrot.slane %v1522_v20, 3 }
 0x1ca   :  { %v1571_v24 = vsel %vm1554_vm12, %v1570_v35, %v1569_v60 }
 0x1cb   :  { %v1573_v61 = vsel %vm1557_vm13, %v1572_v3, %v1571_v24 }
 0x1cc   :  { %v1575_v55 = vsel %vm1560_vm14, %v1574_v37, %v1573_v61 }
 0x1cd   :  { %1579 = vst [vmem:[#allocation5 + $0x8] sm:$0xff] %v1575_v55 }
 0x1ce   :  { %1942 = shalt.err (!%p1939_p9)
}
 0x1cf   :  { %s1960_s10 = smov 128   ;;  %s1961_s11 = smov 8  }
 0x1d0   :  { %1591 = dma.vmem_to_hbm [thread:$0]  %s1586_s8, 256, %s2370_s6, [#allocation4], %s1960_s10, %s1960_s10, %s1961_s11  }
 0x1d1   :  { %1953 = dma.done.wait [#allocation4], 256  }
 0x1d2   :  { %1954 = vsyncadd [#allocation4], 4294967040 }
 0x1d3   :  { %1595 = vsyncpa [#allocation3], 1 }
 0x1d4   :  { %1596 = vsyncpa [#allocation4], 1 }

</bundles_post_ra>
